<compile_context>
chip_gen: v7x
topology: tpu7x:2x2x1
jax: 0.10.0
libtpu: 0.0.40
codegen_flags: <defaults>
</compile_context>

<pallas_src>
import functools

import jax
import jax.numpy as jnp
from jax.experimental import pallas as pl
from jax.experimental.pallas import tpu as pltpu

_LANE = 128


def _round_up(v, m):
    return (v + m - 1) // m * m


def _vmem_capacity_bytes():
    """Per-TensorCore VMEM capacity; conservative fallbacks if the query fails."""
    try:
        cap = getattr(pltpu.get_tpu_info(), "vmem_capacity_bytes", None)
        if cap:
            return int(cap)
    except Exception:
        pass
    try:
        kind = jax.devices()[0].device_kind.lower()
    except Exception:
        return 64 << 20              # unknown: assume the smallest (v7x)
    if "v7" in kind or "7x" in kind:
        return 64 << 20              # v7x: 64 MiB / TensorCore
    return 128 << 20                 # v5e / v6e: 128 MiB


def _plan_tiling(n_nodes, n_feats, usable_bytes, *, tile=None, force_streamed=False):
    """Return (adj_resident, tile, n_pad, f_pad, vmem_need) fitting the budget."""
    f_pad = _round_up(max(n_feats, 1), _LANE)

    def feat_bytes(n_pad):
        # resident original x (f32) + bf16 ping-pong propagated features
        return n_pad * f_pad * 4 + 2 * n_pad * f_pad * 2

    def per_tile_bytes(t):
        # f32 K-accumulator + f32 output staging tile
        return 2 * t * f_pad * 4

    if tile is not None:
        assert tile % _LANE == 0, "tile must be a multiple of 128"

    if not force_streamed:
        # Fully VMEM-resident adjacency (one HBM read of adj, single copy).
        if tile is None:
            n_min = _round_up(n_nodes, _LANE)
            res_tile = n_min if n_min <= 512 else 512
        else:
            res_tile = tile
        n_pad = _round_up(n_nodes, res_tile)
        need = n_pad * n_pad * 2 + feat_bytes(n_pad) + per_tile_bytes(res_tile)
        if need <= usable_bytes:
            return True, res_tile, n_pad, f_pad, need

    # Streamed adjacency tiles (double-buffered by the BlockSpec pipeline);
    # the largest tile that fits amortizes per-grid-step overhead.
    tiles = (tile,) if tile is not None else (1024, 512, 256, 128)
    for t in tiles:
        n_pad = _round_up(n_nodes, t)
        need = 2 * (t * t * 2) + feat_bytes(n_pad) + per_tile_bytes(t)
        if need <= usable_bytes:
            return False, t, n_pad, f_pad, need

    raise ValueError(
        "feature_propagation keeps the propagated features VMEM-resident; "
        f"n_nodes={n_nodes}, n_feats={n_feats} does not fit the "
        f"{usable_bytes / 2**20:.1f} MiB usable VMEM budget.")


def _feature_prop_kernel(adj_in_ref, x_hbm_ref, out_hbm_ref, *scratch,
                         tile_m, tile_k, mask, alpha, adj_resident):
    if adj_resident:
        adj_vmem, x0_vmem, buf_ref, acc_ref, stage_ref, sems = scratch
    else:
        x0_vmem, buf_ref, acc_ref, stage_ref, sems = scratch
        adj_vmem = None

    t = pl.program_id(0)          # propagation iteration
    i = pl.program_id(1)          # output row tile
    k = pl.program_id(2)          # contraction tile
    n_t = pl.num_programs(0)
    n_i = pl.num_programs(1)
    n_k = pl.num_programs(2)

    # ---- one-time setup at the very first grid step -------------------------
    @pl.when(jnp.logical_and(t == 0, jnp.logical_and(i == 0, k == 0)))
    def _():
        cx = pltpu.make_async_copy(x_hbm_ref, x0_vmem, sems.at[0])
        cx.start()
        if adj_resident:
            ca = pltpu.make_async_copy(adj_in_ref, adj_vmem, sems.at[1])
            ca.start()
            ca.wait()
        cx.wait()
        # Seed the "iteration -1" ping-pong slot on-chip (no second HBM read).
        buf_ref[1] = x0_vmem[...].astype(jnp.bfloat16)

    @pl.when(k == 0)
    def _():
        acc_ref[...] = jnp.zeros_like(acc_ref)

    prev_slot = (t + 1) % 2                               # == (t - 1) % 2
    row_start = pl.multiple_of(i * tile_m, tile_m)
    k_start = pl.multiple_of(k * tile_k, tile_k)
    prev_blk = buf_ref[prev_slot, pl.ds(k_start, tile_k), :]        # bf16 [TK, F]
    if adj_resident:
        a_blk = adj_vmem[pl.ds(row_start, tile_m), pl.ds(k_start, tile_k)]
    else:
        a_blk = adj_in_ref[...]                                      # bf16 [TM, TK]
    # bf16 x bf16 -> f32-accumulate on the MXU.
    acc_ref[...] += jnp.dot(a_blk, prev_blk, preferred_element_type=jnp.float32)

    @pl.when(k == n_k - 1)
    def _():
        x0_rows = x0_vmem[pl.ds(row_start, tile_m), :]
        o = acc_ref[...]
        if mask:
            # out[nonzero(x)] = original_x[nonzero(x)]
            o = jnp.where(x0_rows != 0.0, x0_rows, o)
        else:
            # out.mul_(alpha).add_((1 - alpha) * original_x)
            o = alpha * o + (1.0 - alpha) * x0_rows
        buf_ref[t % 2, pl.ds(row_start, tile_m), :] = o.astype(jnp.bfloat16)

        # Only the final iteration reaches HBM: stage the f32 rows and DMA them
        # out manually (single-buffered staging; wait for the previous tile's
        # DMA before reusing the staging buffer).
        @pl.when(t == n_t - 1)
        def _():
            @pl.when(i > 0)
            def _():
                pltpu.make_async_copy(
                    stage_ref, out_hbm_ref.at[pl.ds(0, tile_m)], sems.at[2]).wait()

            stage_ref[...] = o
            pltpu.make_async_copy(
                stage_ref, out_hbm_ref.at[pl.ds(row_start, tile_m)],
                sems.at[2]).start()

            @pl.when(i == n_i - 1)
            def _():
                pltpu.make_async_copy(
                    stage_ref, out_hbm_ref.at[pl.ds(row_start, tile_m)],
                    sems.at[2]).wait()


def feature_propagation(x, edge_index, edge_weight, *, num_iterations, mask,
                        alpha=0.0, tile=None, force_streamed=False):
    """JAX/Pallas equivalent of FeaturePropagation.forward (ld branch identical)."""
    n_nodes, n_feats = x.shape
    x32 = x.astype(jnp.float32)
    alpha = float(alpha)

    # Degenerate configs never need the kernel: alpha == 0 damping collapses
    # every iteration to out = x; zero iterations returns x unchanged.
    if num_iterations <= 0 or (not mask and alpha == 0.0):
        return x32

    # Densify the sparse adjacency (duplicate edges summed, like COO coalesce).
    adj = jnp.zeros((n_nodes, n_nodes), jnp.float32)
    adj = adj.at[edge_index[0], edge_index[1]].add(edge_weight.astype(jnp.float32))

    # ---- VMEM-capacity-aware tiling plan ------------------------------------
    cap = _vmem_capacity_bytes()
    usable = int(cap * 0.85) - (2 << 20)      # headroom for Mosaic internal scratch
    adj_resident, tile_mk, n_pad, f_pad, vmem_need = _plan_tiling(
        n_nodes, n_feats, usable, tile=tile, force_streamed=force_streamed)
    tm = tk = tile_mk
    n_i, n_k = n_pad // tm, n_pad // tk

    adj_p = jnp.pad(adj, ((0, n_pad - n_nodes), (0, n_pad - n_nodes)))
    adj_p = adj_p.astype(jnp.bfloat16)        # halve bytes of the dominant operand
    # TODO(synk): fp8 (v7x) / int8+scales (v5e/v6e) adjacency would halve the
    # streamed HBM bytes again, at an accuracy cost; not enabled.
    x_p = jnp.pad(x32, ((0, n_pad - n_nodes), (0, f_pad - n_feats)))

    kernel = functools.partial(
        _feature_prop_kernel, tile_m=tm, tile_k=tk, mask=bool(mask),
        alpha=alpha, adj_resident=adj_resident)

    adj_hbm_reads = 1 if adj_resident else num_iterations
    flops = 2 * num_iterations * n_pad * n_pad * f_pad
    bytes_accessed = (adj_hbm_reads * n_pad * n_pad * 2   # adjacency (bf16)
                      + n_pad * f_pad * 4                 # x read once
                      + n_pad * f_pad * 4)                # output written once
    cost = pl.CostEstimate(flops=flops, transcendentals=0,
                           bytes_accessed=bytes_accessed)

    vmem_limit = min(int(cap * 0.9), max(vmem_need + (4 << 20), 32 << 20))

    scratch_shapes = []
    if adj_resident:
        scratch_shapes.append(pltpu.VMEM((n_pad, n_pad), jnp.bfloat16))
    scratch_shapes += [
        pltpu.VMEM((n_pad, f_pad), jnp.float32),       # resident original x (f32)
        pltpu.VMEM((2, n_pad, f_pad), jnp.bfloat16),   # ping-pong propagated feats
        pltpu.VMEM((tm, f_pad), jnp.float32),          # K accumulator
        pltpu.VMEM((tm, f_pad), jnp.float32),          # output staging tile
        pltpu.SemaphoreType.DMA((3,)),                 # x load, adj load, out store
    ]

    if adj_resident:
        adj_spec = pl.BlockSpec(memory_space=pl.ANY)   # one manual DMA, then resident
    else:
        adj_spec = pl.BlockSpec((tm, tk), lambda t, i, k: (i, k))   # streamed tiles

    out_p = pl.pallas_call(
        kernel,
        out_shape=jax.ShapeDtypeStruct((n_pad, f_pad), jnp.float32),
        grid=(num_iterations, n_i, n_k),
        in_specs=[adj_spec,
                  pl.BlockSpec(memory_space=pl.ANY)],   # x: raw HBM, DMA'd once
        out_specs=pl.BlockSpec(memory_space=pl.ANY),    # written once, manual DMA
        scratch_shapes=scratch_shapes,
        compiler_params=pltpu.CompilerParams(
            # Row tiles cannot be "parallel": iteration t reads every row tile
            # of iteration t-1 through the shared ping-pong scratch.
            dimension_semantics=("arbitrary", "arbitrary", "arbitrary"),
            vmem_limit_bytes=vmem_limit,
        ),
        cost_estimate=cost,
    )(adj_p, x_p)

    return out_p[:n_nodes, :n_feats]


def _reference(x, edge_index, edge_weight, *, num_iterations, mask, alpha=0.0):
    """Pure-JAX reference mirroring the PyTorch forward, using the same
    bf16-operand / f32-accumulate matmul precision as the kernel."""
    n = x.shape[0]
    adj = jnp.zeros((n, n), jnp.float32).at[edge_index[0], edge_index[1]].add(
        edge_weight.astype(jnp.float32)).astype(jnp.bfloat16)
    x0 = x.astype(jnp.float32)
    nz = x0 != 0.0
    res = (1.0 - alpha) * x0
    out = x0
    for _ in range(num_iterations):
        out = jnp.dot(adj, out.astype(jnp.bfloat16),
                      preferred_element_type=jnp.float32)
        if mask:
            out = jnp.where(nz, x0, out)
        else:
            out = alpha * out + res
    return out


if __name__ == "__main__":
    key = jax.random.PRNGKey(0)
    k1, k2, k3, k4, k5 = jax.random.split(key, 5)

    n_nodes, n_feats, n_edges = 200, 128, 600
    num_iterations = 3

    # Features with ~50% zeros so the nonzero mask is meaningful.
    x = jax.random.normal(k1, (n_nodes, n_feats), dtype=jnp.float32)
    drop = jax.random.bernoulli(k2, 0.5, (n_nodes, n_feats))
    x = jnp.where(drop, 0.0, x)

    # Random edges + positive weights (duplicates allowed -> summed).
    src = jax.random.randint(k3, (n_edges,), 0, n_nodes)
    dst = jax.random.randint(k4, (n_edges,), 0, n_nodes)
    edge_index = jnp.stack([src, dst], axis=0).astype(jnp.int32)
    edge_weight = jnp.abs(jax.random.normal(k5, (n_edges,), dtype=jnp.float32)) + 0.1

    # 1) mask=True, streamed path forced with 128x128 tiles so the
    #    (iter, row, K) grid, ping-pong buffers and per-tile output DMAs are
    #    all exercised (grid = (3, 2, 2)).
    out = jax.block_until_ready(feature_propagation(
        x, edge_index, edge_weight, num_iterations=num_iterations, mask=True,
        alpha=0.0, tile=128, force_streamed=True))
    ref = _reference(x, edge_index, edge_weight,
                     num_iterations=num_iterations, mask=True, alpha=0.0)
    assert out.shape == (n_nodes, n_feats)
    assert jnp.allclose(out, ref, atol=1e-2, rtol=1e-3), \
        float(jnp.max(jnp.abs(out - ref)))

    # 2) mask=False damped branch, auto plan (VMEM-resident adjacency: one HBM
    #    read of adj serves all iterations).
    out2 = jax.block_until_ready(feature_propagation(
        x, edge_index, edge_weight, num_iterations=num_iterations,
        mask=False, alpha=0.5))
    ref2 = _reference(x, edge_index, edge_weight,
                      num_iterations=num_iterations, mask=False, alpha=0.5)
    assert jnp.allclose(out2, ref2, atol=1e-2, rtol=1e-3), \
        float(jnp.max(jnp.abs(out2 - ref2)))

    # 3) mask=True on the auto (resident) plan as well.
    out3 = jax.block_until_ready(feature_propagation(
        x, edge_index, edge_weight, num_iterations=num_iterations,
        mask=True, alpha=0.0))
    assert jnp.allclose(out3, ref, atol=1e-2, rtol=1e-3), \
        float(jnp.max(jnp.abs(out3 - ref)))

    # 4) degenerate damped path (alpha == 0, mask=False): out == x, no kernel.
    out4 = jax.block_until_ready(feature_propagation(
        x, edge_index, edge_weight, num_iterations=num_iterations,
        mask=False, alpha=0.0))
    assert jnp.allclose(out4, x.astype(jnp.float32))

    print("KERNEL_OK")
</pallas_src>

<mosaic_0001>
module attributes {stable_mosaic.version = 11 : i64} {
  func.func @_feature_prop_kernel(%arg0: i32, %arg1: i32, %arg2: i32, %arg3: memref<128x128xbf16, #tpu.memory_space<vmem>>, %arg4: memref<256x128xf32, #tpu.memory_space<any>>, %arg5: memref<256x128xf32, #tpu.memory_space<any>>, %arg6: memref<256x128xf32, #tpu.memory_space<vmem>>, %arg7: memref<2x256x128xbf16, #tpu.memory_space<vmem>>, %arg8: memref<128x128xf32, #tpu.memory_space<vmem>>, %arg9: memref<128x128xf32, #tpu.memory_space<vmem>>, %arg10: memref<3x!tpu.dma_semaphore, #tpu.memory_space<semaphore_mem>>) attributes {dimension_semantics = [#tpu.dimension_semantics<arbitrary>, #tpu.dimension_semantics<arbitrary>, #tpu.dimension_semantics<arbitrary>], iteration_bounds = array<i64: 3, 2, 2>, scalar_prefetch = 0 : i64, scratch_operands = 5 : i64, tpu.core_type = #tpu.core_type<tc>, window_params = [{transform_indices = @transform_0, window_bounds = array<i64: 128, 128>}, {}, {}]} {
    %c0_i32 = arith.constant 0 : i32
    %0 = arith.cmpi eq, %arg0, %c0_i32 : i32
    %c0_i32_0 = arith.constant 0 : i32
    %1 = arith.cmpi eq, %arg1, %c0_i32_0 : i32
    %c0_i32_1 = arith.constant 0 : i32
    %2 = arith.cmpi eq, %arg2, %c0_i32_1 : i32
    %3 = arith.andi %1, %2 : i1
    %4 = arith.andi %0, %3 : i1
    %5 = arith.extui %4 : i1 to i32
    %c0_i32_2 = arith.constant 0 : i32
    %6 = arith.cmpi ne, %5, %c0_i32_2 : i32
    scf.if %6 {
      %c0_i32_19 = arith.constant 0 : i32
      %37 = tpu.memref_slice %arg10[%c0_i32_19] : memref<3x!tpu.dma_semaphore, #tpu.memory_space<semaphore_mem>> -> memref<1x!tpu.dma_semaphore, #tpu.memory_space<semaphore_mem>>
      %38 = tpu.memref_squeeze %37 : memref<1x!tpu.dma_semaphore, #tpu.memory_space<semaphore_mem>> -> memref<!tpu.dma_semaphore, #tpu.memory_space<semaphore_mem>>
      tpu.enqueue_dma source(%arg4 : memref<256x128xf32, #tpu.memory_space<any>>) target(%arg6 : memref<256x128xf32, #tpu.memory_space<vmem>>) target_semaphore(%38 : memref<!tpu.dma_semaphore, #tpu.memory_space<semaphore_mem>>)
      %c0_i32_20 = arith.constant 0 : i32
      %39 = tpu.memref_slice %arg10[%c0_i32_20] : memref<3x!tpu.dma_semaphore, #tpu.memory_space<semaphore_mem>> -> memref<1x!tpu.dma_semaphore, #tpu.memory_space<semaphore_mem>>
      %40 = tpu.memref_squeeze %39 : memref<1x!tpu.dma_semaphore, #tpu.memory_space<semaphore_mem>> -> memref<!tpu.dma_semaphore, #tpu.memory_space<semaphore_mem>>
      tpu.wait_dma2 semaphore(%40 : memref<!tpu.dma_semaphore, #tpu.memory_space<semaphore_mem>>) src(%arg4 : memref<256x128xf32, #tpu.memory_space<any>>) dst(%arg6 : memref<256x128xf32, #tpu.memory_space<vmem>>)
      %c0_21 = arith.constant 0 : index
      %c0_22 = arith.constant 0 : index
      %41 = vector.load %arg6[%c0_21, %c0_22] : memref<256x128xf32, #tpu.memory_space<vmem>>, vector<256x128xf32>
      %42 = arith.truncf %41 : vector<256x128xf32> to vector<256x128xbf16>
      %c1 = arith.constant 1 : index
      %c0_23 = arith.constant 0 : index
      %c0_24 = arith.constant 0 : index
      %43 = vector.load %arg7[%c1, %c0_23, %c0_24] : memref<2x256x128xbf16, #tpu.memory_space<vmem>>, vector<1x256x128xbf16>
      %44 = vector.shape_cast %43 : vector<1x256x128xbf16> to vector<256x128xbf16>
      %45 = vector.shape_cast %42 : vector<256x128xbf16> to vector<1x256x128xbf16>
      tpu.vector_store %arg7[%c1, %c0_23, %c0_24], %45 {strides = array<i32>} : memref<2x256x128xbf16, #tpu.memory_space<vmem>>, vector<1x256x128xbf16>,
    } else {
    }
    %c0_i32_3 = arith.constant 0 : i32
    %7 = arith.cmpi eq, %arg2, %c0_i32_3 : i32
    %8 = arith.extui %7 : i1 to i32
    %c0_i32_4 = arith.constant 0 : i32
    %9 = arith.cmpi ne, %8, %c0_i32_4 : i32
    scf.if %9 {
      %cst_19 = arith.constant 0.000000e+00 : f32
      %37 = vector.broadcast %cst_19 : f32 to vector<128x128xf32>
      %c0_20 = arith.constant 0 : index
      %c0_21 = arith.constant 0 : index
      %38 = vector.load %arg8[%c0_20, %c0_21] : memref<128x128xf32, #tpu.memory_space<vmem>>, vector<128x128xf32>
      tpu.vector_store %arg8[%c0_20, %c0_21], %37 {strides = array<i32>} : memref<128x128xf32, #tpu.memory_space<vmem>>, vector<128x128xf32>,
    } else {
    }
    %c1_i32 = arith.constant 1 : i32
    %10 = arith.addi %arg0, %c1_i32 : i32
    %c2_i32 = arith.constant 2 : i32
    %c0_i32_5 = arith.constant 0 : i32
    %11 = arith.cmpi eq, %c2_i32, %c0_i32_5 : i32
    %c1_i32_6 = arith.constant 1 : i32
    %12 = arith.select %11, %c1_i32_6, %c2_i32 : i32
    %13 = arith.remsi %10, %12 : i32
    %c0_i32_7 = arith.constant 0 : i32
    %14 = arith.cmpi ne, %13, %c0_i32_7 : i32
    %c0_i32_8 = arith.constant 0 : i32
    %15 = arith.cmpi slt, %13, %c0_i32_8 : i32
    %c0_i32_9 = arith.constant 0 : i32
    %16 = arith.cmpi slt, %12, %c0_i32_9 : i32
    %17 = arith.xori %15, %16 : i1
    %18 = arith.andi %17, %14 : i1
    %19 = arith.addi %13, %12 : i32
    %20 = arith.select %18, %19, %13 : i32
    %c128_i32 = arith.constant 128 : i32
    %21 = arith.muli %arg1, %c128_i32 : i32
    %22 = tpu.assume_multiple %21, 128 : i32
    %c128_i32_10 = arith.constant 128 : i32
    %23 = arith.muli %arg2, %c128_i32_10 : i32
    %24 = tpu.assume_multiple %23, 128 : i32
    %25 = arith.index_cast %20 : i32 to index
    %26 = arith.index_cast %24 : i32 to index
    %c0 = arith.constant 0 : index
    %27 = vector.load %arg7[%25, %26, %c0] : memref<2x256x128xbf16, #tpu.memory_space<vmem>>, vector<1x128x128xbf16>
    %28 = vector.shape_cast %27 : vector<1x128x128xbf16> to vector<128x128xbf16>
    %c0_11 = arith.constant 0 : index
    %c0_12 = arith.constant 0 : index
    %29 = vector.load %arg3[%c0_11, %c0_12] : memref<128x128xbf16, #tpu.memory_space<vmem>>, vector<128x128xbf16>
    %c0_13 = arith.constant 0 : index
    %c0_14 = arith.constant 0 : index
    %30 = vector.load %arg8[%c0_13, %c0_14] : memref<128x128xf32, #tpu.memory_space<vmem>>, vector<128x128xf32>
    %cst = arith.constant dense<0.000000e+00> : vector<128x128xf32>
    %31 = tpu.matmul %29, %28, %cst {dimension_numbers = #tpu.dot_dimension_numbers<[1], [0], [0], [1], [0, 0, 1, 1], [], []>} : vector<128x128xbf16>, vector<128x128xbf16>, vector<128x128xf32> -> vector<128x128xf32>
    %32 = arith.addf %30, %31 : vector<128x128xf32>
    %c0_15 = arith.constant 0 : index
    %c0_16 = arith.constant 0 : index
    %33 = vector.load %arg8[%c0_15, %c0_16] : memref<128x128xf32, #tpu.memory_space<vmem>>, vector<128x128xf32>
    tpu.vector_store %arg8[%c0_15, %c0_16], %32 {strides = array<i32>} : memref<128x128xf32, #tpu.memory_space<vmem>>, vector<128x128xf32>,
    %c1_i32_17 = arith.constant 1 : i32
    %34 = arith.cmpi eq, %arg2, %c1_i32_17 : i32
    %35 = arith.extui %34 : i1 to i32
    %c0_i32_18 = arith.constant 0 : i32
    %36 = arith.cmpi ne, %35, %c0_i32_18 : i32
    scf.if %36 {
      %37 = arith.index_cast %22 : i32 to index
      %c0_19 = arith.constant 0 : index
      %38 = vector.load %arg6[%37, %c0_19] : memref<256x128xf32, #tpu.memory_space<vmem>>, vector<128x128xf32>
      %c0_20 = arith.constant 0 : index
      %c0_21 = arith.constant 0 : index
      %39 = vector.load %arg8[%c0_20, %c0_21] : memref<128x128xf32, #tpu.memory_space<vmem>>, vector<128x128xf32>
      %cst_22 = arith.constant 0.000000e+00 : f32
      %40 = vector.broadcast %cst_22 : f32 to vector<128x128xf32>
      %41 = arith.cmpf one, %38, %40 : vector<128x128xf32>
      %42 = arith.select %41, %38, %39 : vector<128x128xi1>, vector<128x128xf32>
      %43 = arith.truncf %42 : vector<128x128xf32> to vector<128x128xbf16>
      %c2_i32_23 = arith.constant 2 : i32
      %c0_i32_24 = arith.constant 0 : i32
      %44 = arith.cmpi eq, %c2_i32_23, %c0_i32_24 : i32
      %c1_i32_25 = arith.constant 1 : i32
      %45 = arith.select %44, %c1_i32_25, %c2_i32_23 : i32
      %46 = arith.remsi %arg0, %45 : i32
      %c0_i32_26 = arith.constant 0 : i32
      %47 = arith.cmpi ne, %46, %c0_i32_26 : i32
      %c0_i32_27 = arith.constant 0 : i32
      %48 = arith.cmpi slt, %46, %c0_i32_27 : i32
      %c0_i32_28 = arith.constant 0 : i32
      %49 = arith.cmpi slt, %45, %c0_i32_28 : i32
      %50 = arith.xori %48, %49 : i1
      %51 = arith.andi %50, %47 : i1
      %52 = arith.addi %46, %45 : i32
      %53 = arith.select %51, %52, %46 : i32
      %54 = arith.index_cast %53 : i32 to index
      %55 = arith.index_cast %22 : i32 to index
      %c0_29 = arith.constant 0 : index
      %56 = vector.load %arg7[%54, %55, %c0_29] : memref<2x256x128xbf16, #tpu.memory_space<vmem>>, vector<1x128x128xbf16>
      %57 = vector.shape_cast %56 : vector<1x128x128xbf16> to vector<128x128xbf16>
      %58 = vector.shape_cast %43 : vector<128x128xbf16> to vector<1x128x128xbf16>
      tpu.vector_store %arg7[%54, %55, %c0_29], %58 {strides = array<i32>} : memref<2x256x128xbf16, #tpu.memory_space<vmem>>, vector<1x128x128xbf16>,
      %c2_i32_30 = arith.constant 2 : i32
      %59 = arith.cmpi eq, %arg0, %c2_i32_30 : i32
      %60 = arith.extui %59 : i1 to i32
      %c0_i32_31 = arith.constant 0 : i32
      %61 = arith.cmpi ne, %60, %c0_i32_31 : i32
      scf.if %61 {
        %c0_i32_32 = arith.constant 0 : i32
        %62 = arith.cmpi sgt, %arg1, %c0_i32_32 : i32
        %63 = arith.extui %62 : i1 to i32
        %c0_i32_33 = arith.constant 0 : i32
        %64 = arith.cmpi ne, %63, %c0_i32_33 : i32
        scf.if %64 {
          %c2_i32_40 = arith.constant 2 : i32
          %c0_i32_41 = arith.constant 0 : i32
          %c0_i32_42 = arith.constant 0 : i32
          %72 = tpu.memref_slice %arg5[%c0_i32_41, %c0_i32_42] : memref<256x128xf32, #tpu.memory_space<any>> -> memref<128x128xf32, #tpu.memory_space<any>>
          %73 = tpu.memref_slice %arg10[%c2_i32_40] : memref<3x!tpu.dma_semaphore, #tpu.memory_space<semaphore_mem>> -> memref<1x!tpu.dma_semaphore, #tpu.memory_space<semaphore_mem>>
          %74 = tpu.memref_squeeze %73 : memref<1x!tpu.dma_semaphore, #tpu.memory_space<semaphore_mem>> -> memref<!tpu.dma_semaphore, #tpu.memory_space<semaphore_mem>>
          tpu.wait_dma2 semaphore(%74 : memref<!tpu.dma_semaphore, #tpu.memory_space<semaphore_mem>>) src(%arg9 : memref<128x128xf32, #tpu.memory_space<vmem>>) dst(%72 : memref<128x128xf32, #tpu.memory_space<any>>)
        } else {
        }
        %c0_34 = arith.constant 0 : index
        %c0_35 = arith.constant 0 : index
        %65 = vector.load %arg9[%c0_34, %c0_35] : memref<128x128xf32, #tpu.memory_space<vmem>>, vector<128x128xf32>
        tpu.vector_store %arg9[%c0_34, %c0_35], %42 {strides = array<i32>} : memref<128x128xf32, #tpu.memory_space<vmem>>, vector<128x128xf32>,
        %c2_i32_36 = arith.constant 2 : i32
        %c0_i32_37 = arith.constant 0 : i32
        %66 = tpu.memref_slice %arg5[%22, %c0_i32_37] : memref<256x128xf32, #tpu.memory_space<any>> -> memref<128x128xf32, #tpu.memory_space<any>>
        %67 = tpu.memref_slice %arg10[%c2_i32_36] : memref<3x!tpu.dma_semaphore, #tpu.memory_space<semaphore_mem>> -> memref<1x!tpu.dma_semaphore, #tpu.memory_space<semaphore_mem>>
        %68 = tpu.memref_squeeze %67 : memref<1x!tpu.dma_semaphore, #tpu.memory_space<semaphore_mem>> -> memref<!tpu.dma_semaphore, #tpu.memory_space<semaphore_mem>>
        tpu.enqueue_dma source(%arg9 : memref<128x128xf32, #tpu.memory_space<vmem>>) target(%66 : memref<128x128xf32, #tpu.memory_space<any>>) target_semaphore(%68 : memref<!tpu.dma_semaphore, #tpu.memory_space<semaphore_mem>>)
        %c1_i32_38 = arith.constant 1 : i32
        %69 = arith.cmpi eq, %arg1, %c1_i32_38 : i32
        %70 = arith.extui %69 : i1 to i32
        %c0_i32_39 = arith.constant 0 : i32
        %71 = arith.cmpi ne, %70, %c0_i32_39 : i32
        scf.if %71 {
          %c2_i32_40 = arith.constant 2 : i32
          %c0_i32_41 = arith.constant 0 : i32
          %72 = tpu.memref_slice %arg5[%22, %c0_i32_41] : memref<256x128xf32, #tpu.memory_space<any>> -> memref<128x128xf32, #tpu.memory_space<any>>
          %73 = tpu.memref_slice %arg10[%c2_i32_40] : memref<3x!tpu.dma_semaphore, #tpu.memory_space<semaphore_mem>> -> memref<1x!tpu.dma_semaphore, #tpu.memory_space<semaphore_mem>>
          %74 = tpu.memref_squeeze %73 : memref<1x!tpu.dma_semaphore, #tpu.memory_space<semaphore_mem>> -> memref<!tpu.dma_semaphore, #tpu.memory_space<semaphore_mem>>
          tpu.wait_dma2 semaphore(%74 : memref<!tpu.dma_semaphore, #tpu.memory_space<semaphore_mem>>) src(%arg9 : memref<128x128xf32, #tpu.memory_space<vmem>>) dst(%72 : memref<128x128xf32, #tpu.memory_space<any>>)
        } else {
        }
      } else {
      }
    } else {
    }
    return
  }
  func.func @transform_0(%arg0: i32, %arg1: i32, %arg2: i32) -> (i32, i32) {
    %c0_i32 = arith.constant 0 : i32
    return %arg1, %arg2 : i32, i32
  }
}

</mosaic_0001>

<bundles_post_ra>
// kernel: tpu_custom_call.1
= control target key start
LH: loop header
LB: loop body
LE: loop exit
PB: predicated region body
PF: predicated region fallthrough
CT: control target
= control target key end

     0   :  { %7 = vsyncpa [#allocation8], 0  ;;  %s1375_s0 = inlined_call_operand.hbm [shape: bf16[256,256], index: 0, kind: input, shape index: {}]   ;;  %s1376_s1 = inlined_call_operand.hbm [shape: f32[256,128], index: 1, kind: input, shape index: {}]   ;;  %s1377_s2 = inlined_call_operand.hbm [shape: f32[256,128], index: 2, kind: output, shape index: {}]  }
   0x1   :  { %9 = vsyncpa [#allocation8 + $0x1], 0  ;;  %s1092_s9 = smov 0   ;;  %s1094_s10 = smov 0  }
   0x2   :  { %s1096_s11 = smov 0   ;;  %s1098_s12 = smov 0  }
   0x3   :  { %s1100_s13 = smov 0   ;;  %s1102_s14 = smov 0  }
   0x4   :  { %s1104_s15 = smov 0   ;;  %s1106_s16 = smov 0  }
   0x5   :  { %s1108_s17 = smov 0   ;;  %s1110_s18 = smov 0  }
   0x6 LB: > { %s687_s19 = sadd.s32 4294967295, %s1068_s18   ;;  %s23_s20 = sadd.s32 1, %s1056_s15  ;;  %s1068_s18 = sphi %s1110_s18, %s15_s18   ;;  %s1064_s17 = sphi %s1108_s17, %s1389_s17   ;;  %s1060_s16 = sphi %s1106_s16, %s1388_s16   ;;  %s1056_s15 = sphi %s1104_s15, %s1387_s15   ;;  %s1052_s14 = sphi %s1102_s14, %s1386_s14   ;;  %s1048_s13 = sphi %s1100_s13, %s1385_s13   ;;  %s1044_s12 = sphi %s1098_s12, %s1384_s12   ;;  %s1040_s11 = sphi %s1096_s11, %s1383_s11   ;;  %s1036_s10 = sphi %s1094_s10, %s1382_s10   ;;  %s1032_s9 = sphi %s1092_s9, %s1381_s9  }
   0x7   : > { %p24_p0 = scmp.ge.s32.totalorder %s23_s20, 2  ;;  %s26_s21 = sadd.s32 1, %s1060_s16 }
   0x8   : > { %s30_s22 = sadd.s32 1, %s1064_s17  ;;  %s39_s23 = sadd.s32 1, %s1040_s11 }
   0x9   : > { %s1391_s20 = smov (%p24_p0, %s23_s20), 0  ;;  %s1393_s21 = smov (!%p24_p0, %s26_s21), %s1060_s16 }
   0xa   : > { %s35_s24 = ssub.s32 %s1056_s15, %s1391_s20  ;;  %p45_p1 = scmp.ne.s32.totalorder %s1040_s11, %s1036_s10 }
   0xb   : > { %p28_p2 = scmp.ge.s32.totalorder %s1393_s21, 2  ;;  %p46_p3 = scmp.eq.s32.totalorder %s1068_s18, 0 }
   0xc   : > { %p52_p4 = scmp.ne.s32.totalorder %s1036_s10, %s1032_s9  ;;  %p53_p5 = scmp.eq.s32.totalorder %s687_s19, 0 }
   0xd   : > { %s1395_s21 = smov (%p28_p2, %s1393_s21), 0  ;;  %s1397_s22 = smov (!%p28_p2, %s30_s22), %s1064_s17 }
   0xe   : > { %s34_s25 = ssub.s32 %s1060_s16, %s1395_s21  ;;  %p1162_p6 = por %p46_p3, %p45_p1 }
   0xf   : > { %p32_p7 = scmp.ge.s32.totalorder %s1397_s22, 3  ;;  %s36_s27 = sor.u32 %s35_s24, %s34_s25 }
  0x10   : > { %p37_p8 = scmp.eq.s32.totalorder %s36_s27, 0  ;;  %p1166_p9 = por %p53_p5, %p52_p4 }
  0x11   : > { %s1399_s22 = smov (%p32_p7, %s1397_s22), 0  ;;  %p803_p10 = scmp.lt.s32.totalorder %s1068_s18, 12 }
  0x12   : > { %s1173_s29 = scalar_select %p37_p8, %s1040_s11, %s39_s23  }
  0x13   : > { %s67_s30 = sand.u32 1, %s1040_s11   ;;  %s727_s3 = sshll.u32 %s1060_s16, 5 }
  0x14   : > { %s691_s4 = sshll.u32 %s67_s30, 6  ;;  %s77_s5 = sadd.s32 %s1056_s15, %s727_s3 }
  0x15   : > { %s694_s6 = sshll.u32 %s77_s5, 6  ;;  %s71_s7 = scalar_lea.vmem [#allocation7], %s691_s4 }
  0x16   : > { %s80_s8 = sshll.u32 %s71_s7, 4  ;;  %s1182_s24 = scalar_lea.hbm %s1375_s0, %s694_s6  ;;  %s1184_s8 = int_to_ptr.vmem [resolvable:$true] %s80_s8 }
  0x17   : > { %p1188_p11 = pnand %p803_p10, %p1162_p6  ;;  %s1192_s25 = scalar_lea.sflag [#allocation8], %s67_s30 }
  0x18   : > { %s900_s27 = scalar_lea.hbm %s1182_s24, 1024  ;;  %s905_s26 = scalar_lea.hbm %s1375_s0, 4096 }
  0x19   : > { %p901_p12 = scmp.ne.s32.totalorder %s1182_s24, %s900_s27  ;;  %p902_p13 = pneg %p1188_p11 }
  0x1a   : > { %p906_p2 = scmp.lt.u32.totalorder %s1182_s24, %s1375_s0  ;;  %p907_p3 = scmp.lt.u32.totalorder %s905_s26, %s900_s27 }
  0x1b   : > { %p903_p0 = pnand %p902_p13, %p901_p12  ;;  %p909_p5 = scmp.lt.u32.totalorder %s900_s27, %s1182_s24 }
  0x1c   : > { %p908_p4 = por %p907_p3, %p906_p2 }
  0x1d   : > { %p904_p1 = pneg %p903_p0 }
  0x1e   : > { %p910_p6 = por %p909_p5, %p908_p4 }
  0x20   : > { %p911_p7 = pnand %p910_p6, %p904_p1 }
  0x22   : > { %914 = shalt.err (!%p911_p7)
}
  0x23   : > { %s915_s30 = scalar_lea.vmem %s1184_s8, 1024  ;;  %s1070_s7 = smov [#allocation7]  }
  0x24   : > { %p916_p8 = scmp.ne.s32.totalorder %s1184_s8, %s915_s30  ;;  %s920_s9 = sshll.u32 %s1070_s7, 4  ;;  %s921_s9 = int_to_ptr.vmem [resolvable:$false] %s920_s9 }
  0x25   : > { %s922_s19 = scalar_lea.vmem %s921_s9, 2048  ;;  %p923_p0 = scmp.lt.s32.totalorder %s1184_s8, %s921_s9 }
  0x26   : > { %p918_p10 = pnand %p916_p8, %p902_p13  ;;  %p924_p2 = scmp.lt.s32.totalorder %s922_s19, %s915_s30 }
  0x28   : > { %p919_p12 = pneg %p918_p10  ;;  %p925_p3 = por %p924_p2, %p923_p0 }
  0x2a   : > { %p926_p4 = pnand %p925_p3, %p919_p12 }
  0x2c   : > { %929 = shalt.err (!%p926_p4)
}
  0x2d   : > { %s1071_s27 = smov 128   ;;  %s1072_s3 = smov 64  }
  0x2e   : > { %s1073_s4 = smov 4   ;;  %p696_p13 = scmp.lt.s32.totalorder %s1068_s18, 1 }
  0x2f   : > { %802 = dma.hbm_to_vmem [thread:$0]  (!%p1188_p11), %s1182_s24, 1024, %s1184_s8, %s1192_s25, %s1071_s27, %s1072_s3, %s1073_s4  }
  0x30   : > { %90 = sbr.rel (%p696_p13) target bundleno = 417 (0x1a1), region = 24  ;;  %s92_s26 = sand.u32 (!%p696_p13), 1, %s1036_s10  }
  0x31   : > { %s697_s5 = sshll.u32 (!%p696_p13), %s92_s26, 6  ;;  %s93_s6 = scalar_lea.sflag (!%p696_p13), [#allocation8], %s92_s26 }
  0x32   : > { %s1222_s30 = scalar_lea.vmem (!%p696_p13), [#allocation7], %s697_s5 }
  0x37   : > { %1017 = dma.done.wait (%p1166_p9), %s93_s6, 1024  }
  0x38   : > { %1019 = vsyncadd (%p1166_p9), %s93_s6, 4294966272  ;;  %p111_p1 = scmp.eq.s32.totalorder %s1048_s13, 0  ;;  %p112_p11 = scmp.eq.s32.totalorder %s1044_s12, 0 }
  0x39   : > { %p110_p5 = scmp.eq.s32.totalorder %s1052_s14, 0 }
  0x3a   : > { %p113_p6 = pnand %p112_p11, %p111_p1 }
  0x3c   : > { %p114_p7 = pneg %p113_p6 }
  0x3e   : > { %p115_p8 = pnand %p114_p7, %p110_p5 }
  0x3f   : > { %s1074_s8 = smov (!%p115_p8), [#allocation2]   ;;  %s930_s7 = scalar_lea.hbm (!%p115_p8), %s1376_s1, 4096 }
  0x40   : > { %118 = sbr.rel (%p115_p8) target bundleno = 97 (0x61), region = 32  ;;  %s126_s24 = sshll.u32 (!%p115_p8), %s1074_s8, 4  ;;  %s127_s24 = int_to_ptr.vmem [resolvable:$true] %s126_s24 }
  0x41   : > { %p931_p9 = scmp.ne.s32.totalorder (!%p115_p8), %s1376_s1, %s930_s7  ;;  %p934_p10 = scmp.lt.u32.totalorder (!%p115_p8), %s930_s7, %s1376_s1 }
  0x43   : > { %p936_p12 = pnand (!%p115_p8), %p934_p10, %p931_p9 }
  0x47   : > { %939 = shalt.err (!%p936_p12)  }
  0x48   : > { %s940_s3 = scalar_lea.vmem %s127_s24, 4096  ;;  %p945_p2 = scmp.lt.s32.totalorder %s127_s24, %s127_s24 }
  0x49   : > { %p941_p0 = scmp.ne.s32.totalorder %s127_s24, %s940_s3  ;;  %p946_p3 = scmp.lt.s32.totalorder %s940_s3, %s940_s3 }
  0x4b   : > { %p947_p4 = por %p946_p3, %p945_p2 }
  0x4d   : > { %p948_p13 = pnand %p947_p4, %p941_p0 }
  0x4f   : > { %951 = shalt.err (!%p948_p13)  }
  0x50   : > { %129 = dma.hbm_to_vmem [thread:$0]  %s1376_s1, 4096, %s127_s24, [#allocation6] }
  0x51   : > { %1020 = dma.done.wait [#allocation6], 4096 }
  0x52   : > { %1021 = vsyncadd [#allocation6], 4294963200  ;;  %v133_v0 = vld [vmem:[#allocation2] sm:$0xff]  ;;  %v134_v1 = vld [vmem:[#allocation2 + $0x8] sm:$0xff] }
  0x53   : > { %v135_v2 = vld [vmem:[#allocation2 + $0x10] sm:$0xff]  ;;  %v165_v3 = vpack.c.bf16 %v134_v1, %v133_v0  ;;  %v136_v4 = vld [vmem:[#allocation2 + $0x18] sm:$0xff]  ;;  %v137_v5 = vld [vmem:[#allocation2 + $0x20] sm:$0xff] }
  0x54   : > { %v138_v6 = vld [vmem:[#allocation2 + $0x28] sm:$0xff]  ;;  %v166_v7 = vpack.c.bf16 %v136_v4, %v135_v2  ;;  %v139_v9 = vld [vmem:[#allocation2 + $0x30] sm:$0xff]  ;;  %v140_v10 = vld [vmem:[#allocation2 + $0x38] sm:$0xff] }
  0x55   : > { %v167_v8 = vpack.c.bf16 %v138_v6, %v137_v5  ;;  %v141_v11 = vld [vmem:[#allocation2 + $0x40] sm:$0xff]  ;;  %182 = vst [vmem:[#allocation3 + $0x80] sm:$0xff] %v165_v3  ;;  %v168_v12 = vpack.c.bf16 %v140_v10, %v139_v9  ;;  %v142_v13 = vld [vmem:[#allocation2 + $0x48] sm:$0xff]  ;;  %v143_v14 = vld [vmem:[#allocation2 + $0x50] sm:$0xff] }
  0x56   : > { %v144_v15 = vld [vmem:[#allocation2 + $0x58] sm:$0xff]  ;;  %183 = vst [vmem:[#allocation3 + $0x88] sm:$0xff] %v166_v7  ;;  %v169_v16 = vpack.c.bf16 %v142_v13, %v141_v11  ;;  %v145_v18 = vld [vmem:[#allocation2 + $0x60] sm:$0xff]  ;;  %v146_v19 = vld [vmem:[#allocation2 + $0x68] sm:$0xff] }
  0x57   : > { %184 = vst [vmem:[#allocation3 + $0x90] sm:$0xff] %v167_v8  ;;  %v170_v17 = vpack.c.bf16 %v144_v15, %v143_v14  ;;  %v147_v20 = vld [vmem:[#allocation2 + $0x70] sm:$0xff]  ;;  %185 = vst [vmem:[#allocation3 + $0x98] sm:$0xff] %v168_v12  ;;  %v171_v21 = vpack.c.bf16 %v146_v19, %v145_v18  ;;  %v148_v22 = vld [vmem:[#allocation2 + $0x78] sm:$0xff] }
  0x58   : > { %v149_v23 = vld [vmem:[#allocation2 + $0x80] sm:$0xff]  ;;  %v150_v24 = vld [vmem:[#allocation2 + $0x88] sm:$0xff]  ;;  %186 = vst [vmem:[#allocation3 + $0xa0] sm:$0xff] %v169_v16  ;;  %v172_v25 = vpack.c.bf16 %v148_v22, %v147_v20  ;;  %v151_v27 = vld [vmem:[#allocation2 + $0x90] sm:$0xff] }
  0x59   : > { %187 = vst [vmem:[#allocation3 + $0xa8] sm:$0xff] %v170_v17  ;;  %v173_v26 = vpack.c.bf16 %v150_v24, %v149_v23  ;;  %v152_v28 = vld [vmem:[#allocation2 + $0x98] sm:$0xff]  ;;  %v153_v29 = vld [vmem:[#allocation2 + $0xa0] sm:$0xff]  ;;  %188 = vst [vmem:[#allocation3 + $0xb0] sm:$0xff] %v171_v21 }
  0x5a   : > { %v174_v30 = vpack.c.bf16 %v152_v28, %v151_v27  ;;  %v154_v31 = vld [vmem:[#allocation2 + $0xa8] sm:$0xff]  ;;  %v155_v32 = vld [vmem:[#allocation2 + $0xb0] sm:$0xff]  ;;  %v156_v33 = vld [vmem:[#allocation2 + $0xb8] sm:$0xff]  ;;  %189 = vst [vmem:[#allocation3 + $0xb8] sm:$0xff] %v172_v25 }
  0x5b   : > { %190 = vst [vmem:[#allocation3 + $0xc0] sm:$0xff] %v173_v26  ;;  %v175_v34 = vpack.c.bf16 %v154_v31, %v153_v29  ;;  %v176_v35 = vpack.c.bf16 %v156_v33, %v155_v32  ;;  %v157_v36 = vld [vmem:[#allocation2 + $0xc0] sm:$0xff]  ;;  %v158_v37 = vld [vmem:[#allocation2 + $0xc8] sm:$0xff]  ;;  %v159_v38 = vld [vmem:[#allocation2 + $0xd0] sm:$0xff] }
  0x5c   : > { %191 = vst [vmem:[#allocation3 + $0xc8] sm:$0xff] %v174_v30  ;;  %v177_v39 = vpack.c.bf16 %v158_v37, %v157_v36  ;;  %v160_v40 = vld [vmem:[#allocation2 + $0xd8] sm:$0xff]  ;;  %v161_v41 = vld [vmem:[#allocation2 + $0xe0] sm:$0xff]  ;;  %v162_v42 = vld [vmem:[#allocation2 + $0xe8] sm:$0xff] }
  0x5d   : > { %192 = vst [vmem:[#allocation3 + $0xd0] sm:$0xff] %v175_v34  ;;  %193 = vst [vmem:[#allocation3 + $0xd8] sm:$0xff] %v176_v35  ;;  %v178_v43 = vpack.c.bf16 %v160_v40, %v159_v38  ;;  %v179_v44 = vpack.c.bf16 %v162_v42, %v161_v41  ;;  %v163_v45 = vld [vmem:[#allocation2 + $0xf0] sm:$0xff]  ;;  %v164_v46 = vld [vmem:[#allocation2 + $0xf8] sm:$0xff] }
  0x5e   : > { %194 = vst [vmem:[#allocation3 + $0xe0] sm:$0xff] %v177_v39  ;;  %v180_v47 = vpack.c.bf16 %v164_v46, %v163_v45 }
  0x5f   : > { %195 = vst [vmem:[#allocation3 + $0xe8] sm:$0xff] %v178_v43  ;;  %196 = vst [vmem:[#allocation3 + $0xf0] sm:$0xff] %v179_v44 }
  0x60   : > { %197 = vst [vmem:[#allocation3 + $0xf8] sm:$0xff] %v180_v47 }
  0x61 PF: > { %p698_p1 = scmp.ne.s32.totalorder %s1044_s12, 0 }
  0x62   : > { %v1075_v48 = vmov (!%p698_p1), 0.0  }
  0x63   : > { %200 = sbr.rel (%p698_p1) target bundleno = 107 (0x6b), region = 40  ;;  %201 = vst [vmem:[#allocation4] sm:$0xff] (!%p698_p1), %v1075_v48  ;;  %202 = vst [vmem:[#allocation4 + $0x8] sm:$0xff] (!%p698_p1), %v1075_v48 }
  0x64   : > { %203 = vst [vmem:[#allocation4 + $0x10] sm:$0xff] (!%p698_p1), %v1075_v48  ;;  %204 = vst [vmem:[#allocation4 + $0x18] sm:$0xff] (!%p698_p1), %v1075_v48 }
  0x65   : > { %205 = vst [vmem:[#allocation4 + $0x20] sm:$0xff] (!%p698_p1), %v1075_v48  ;;  %206 = vst [vmem:[#allocation4 + $0x28] sm:$0xff] (!%p698_p1), %v1075_v48 }
  0x66   : > { %207 = vst [vmem:[#allocation4 + $0x30] sm:$0xff] (!%p698_p1), %v1075_v48  ;;  %208 = vst [vmem:[#allocation4 + $0x38] sm:$0xff] (!%p698_p1), %v1075_v48 }
  0x67   : > { %209 = vst [vmem:[#allocation4 + $0x40] sm:$0xff] (!%p698_p1), %v1075_v48  ;;  %210 = vst [vmem:[#allocation4 + $0x48] sm:$0xff] (!%p698_p1), %v1075_v48 }
  0x68   : > { %211 = vst [vmem:[#allocation4 + $0x50] sm:$0xff] (!%p698_p1), %v1075_v48  ;;  %212 = vst [vmem:[#allocation4 + $0x58] sm:$0xff] (!%p698_p1), %v1075_v48 }
  0x69   : > { %213 = vst [vmem:[#allocation4 + $0x60] sm:$0xff] (!%p698_p1), %v1075_v48  ;;  %214 = vst [vmem:[#allocation4 + $0x68] sm:$0xff] (!%p698_p1), %v1075_v48 }
  0x6a   : > { %215 = vst [vmem:[#allocation4 + $0x70] sm:$0xff] %v1075_v48  ;;  %216 = vst [vmem:[#allocation4 + $0x78] sm:$0xff] %v1075_v48 }
  0x6b PF: > { %s217_s5 = sadd.s32 1, %s1052_s14  ;;  %s702_s6 = sshll.u32 %s1048_s13, 7  ;;  %v892_v49 = vld [vmem:[%s1222_s30] sm:$0xff]   ;;  %v894_v59 = vld [vmem:[%s1222_s30 + $0x8] sm:$0xff]   ;;  %v896_v61 = vld [vmem:[%s1222_s30 + $0x10] sm:$0xff]  }
  0x6c   : > { %p218_p11 = scmp.lt.s32.totalorder %s217_s5, 0  ;;  %s219_s8 = ssub.s32 0, %s217_s5  ;;  %v893_v50 = vld [vmem:[%s1222_s30 + $0x20] sm:$0xff]   ;;  %761 = vmatprep.mubr.bf16.mxu0 %v892_v49  ;;  %v895_v60 = vld [vmem:[%s1222_s30 + $0x28] sm:$0xff]   ;;  %v897_v62 = vld [vmem:[%s1222_s30 + $0x30] sm:$0xff]  }
  0x6d   : > { %s699_s24 = smin.u32 %s219_s8, %s217_s5  ;;  %769 = vmatprep.mubr.bf16.mxu1 %v893_v50  ;;  %s703_s7 = sshll.u32 %s1044_s12, 7  ;;  %v898_v63 = vld [vmem:[%s1222_s30 + $0x18] sm:$0xff]   ;;  %v264_v1 = vld [vmem:[#allocation4 + $0x10] sm:$0xff]  ;;  %v262_v3 = vld [vmem:[#allocation4] sm:$0xff] }
  0x6e   : > { %s221_s23 = sand.u32 1, %s699_s24   ;;  %s232_s28 = sshra.s32 %s703_s7, 4  ;;  %v899_v0 = vld [vmem:[%s1222_s30 + $0x38] sm:$0xff]   ;;  %v263_v13 = vld [vmem:[#allocation4 + $0x8] sm:$0xff]  ;;  %v268_v25 = vld [vmem:[#allocation4 + $0x30] sm:$0xff] }
  0x6f   : > { %s222_s25 = ssub.s32 0, %s221_s23  ;;  %v270_v4 = vld [vmem:[#allocation4 + $0x40] sm:$0xff]  ;;  %v265_v7 = vld [vmem:[#allocation4 + $0x18] sm:$0xff]  ;;  %v271_v14 = vld [vmem:[#allocation4 + $0x48] sm:$0xff]  ;;  %p714_p6 = scmp.ne.s32.totalorder %s1044_s12, 1 }
  0x70   : > { %s1401_s25 = smov (!%p218_p11, %s222_s25), %s221_s23  ;;  %v272_v2 = vld [vmem:[#allocation4 + $0x50] sm:$0xff]  ;;  %v273_v8 = vld [vmem:[#allocation4 + $0x58] sm:$0xff]  ;;  %v266_v27 = vld [vmem:[#allocation4 + $0x20] sm:$0xff]  ;;  %s1268_s30 = scalar_lea.vmem (!%p714_p6), [#allocation2], %s702_s6 }
  0x71   : > { %p701_p5 = scmp.lt.s32.totalorder %s1401_s25, 0  ;;  %s228_s9 = sadd.s32 2, %s1401_s25  ;;  %v276_v26 = vld [vmem:[#allocation4 + $0x70] sm:$0xff]  ;;  %v274_v28 = vld [vmem:[#allocation4 + $0x60] sm:$0xff]  ;;  %v269_v31 = vld [vmem:[#allocation4 + $0x38] sm:$0xff] }
  0x72   : > { %v277_v32 = vld [vmem:[#allocation4 + $0x78] sm:$0xff]  ;;  %v267_v37 = vld [vmem:[#allocation4 + $0x28] sm:$0xff]  ;;  %p532_p7 = scmp.lt.s32.totalorder (!%p714_p6), %s1052_s14, 0  ;;  %s533_s12 = ssub.s32 (!%p714_p6), 0, %s1052_s14 }
  0x73   : > { %s1403_s9 = smov (!%p701_p5, %s228_s9), %s1401_s25  ;;  %v275_v38 = vld [vmem:[#allocation4 + $0x68] sm:$0xff]  ;;  %s715_s26 = smin.u32 (!%p714_p6), %s1052_s14, %s533_s12 }
  0x74   : > { %s704_s19 = sshll.u32 %s1403_s9, 4  ;;  %s535_s5 = sand.u32 (!%p714_p6), 1, %s715_s26  }
  0x75   : > { %s235_s27 = sadd.s32 %s704_s19, %s232_s28  ;;  %s536_s8 = ssub.s32 (!%p714_p6), 0, %s535_s5 }
  0x76   : > { %s705_s3 = sshll.u32 %s235_s27, 3  ;;  %s544_s23 = sshra.s32 (!%p714_p6), %s702_s6, 4 }
  0x77   : > { %s1249_s4 = scalar_lea.vmem [#allocation3], %s705_s3  ;;  %p720_p9 = scmp.ne.s32.totalorder (!%p714_p6), %s1052_s14, 2 }
  0x78   : > { %v238_v51 = vld [vmem:[%s1249_s4] sm:$0xff]  ;;  %v239_v52 = vld [vmem:[%s1249_s4 + $0x8] sm:$0xff]  ;;  %v240_v53 = vld [vmem:[%s1249_s4 + $0x10] sm:$0xff] }
  0x79   : > { %745 = vmatprep.subr.bf16.mxu0 %v238_v51  ;;  %777 = vmatprep.subr.bf16.mxu1 %v238_v51  ;;  %v241_v54 = vld [vmem:[%s1249_s4 + $0x18] sm:$0xff]  ;;  %v242_v55 = vld [vmem:[%s1249_s4 + $0x20] sm:$0xff]  ;;  %v243_v56 = vld [vmem:[%s1249_s4 + $0x28] sm:$0xff] }
  0x7a   : > { %746 = vmatpush3.bf16.msra.mxu0 %v238_v51  ;;  %785 = vmatpush3.bf16.msra.mxu1 %v238_v51  ;;  %v244_v57 = vld [vmem:[%s1249_s4 + $0x30] sm:$0xff]  ;;  %v245_v58 = vld [vmem:[%s1249_s4 + $0x38] sm:$0xff] }
  0x7b   : > { %747 = vmatprep.subr.bf16.mxu0 %v239_v52  ;;  %778 = vmatprep.subr.bf16.mxu1 %v239_v52 }
  0x7e   : > { %748 = vmatpush3.bf16.msra.mxu0 %v239_v52  ;;  %786 = vmatpush3.bf16.msra.mxu1 %v239_v52  ;;  %v460_v52 = vld [vmem:[%s1268_s30] sm:$0xff] (!%p714_p6) }
  0x7f   : > { %749 = vmatprep.subr.bf16.mxu0 %v240_v53  ;;  %779 = vmatprep.subr.bf16.mxu1 %v240_v53  ;;  %vm492_vm0 = vcmp.ne.f32.partialorder (!%p714_p6), %v460_v52, 0.0 }
  0x82   : > { %750 = vmatpush3.bf16.msra.mxu0 %v240_v53  ;;  %787 = vmatpush3.bf16.msra.mxu1 %v240_v53  ;;  %v461_v53 = vld [vmem:[%s1268_s30 + $0x8] sm:$0xff] (!%p714_p6) }
  0x83   : > { %751 = vmatprep.subr.bf16.mxu0 %v241_v54  ;;  %780 = vmatprep.subr.bf16.mxu1 %v241_v54  ;;  %vm493_vm1 = vcmp.ne.f32.partialorder (!%p714_p6), %v461_v53, 0.0 }
  0x86   : > { %752 = vmatpush3.bf16.msra.mxu0 %v241_v54  ;;  %788 = vmatpush3.bf16.msra.mxu1 %v241_v54  ;;  %v462_v54 = vld [vmem:[%s1268_s30 + $0x10] sm:$0xff] (!%p714_p6) }
  0x87   : > { %753 = vmatprep.subr.bf16.mxu0 %v242_v55  ;;  %781 = vmatprep.subr.bf16.mxu1 %v242_v55  ;;  %vm494_vm2 = vcmp.ne.f32.partialorder (!%p714_p6), %v462_v54, 0.0 }
  0x8a   : > { %754 = vmatpush3.bf16.msra.mxu0 %v242_v55  ;;  %789 = vmatpush3.bf16.msra.mxu1 %v242_v55  ;;  %v463_v55 = vld [vmem:[%s1268_s30 + $0x18] sm:$0xff] (!%p714_p6) }
  0x8b   : > { %755 = vmatprep.subr.bf16.mxu0 %v243_v56  ;;  %782 = vmatprep.subr.bf16.mxu1 %v243_v56  ;;  %vm495_vm3 = vcmp.ne.f32.partialorder (!%p714_p6), %v463_v55, 0.0 }
  0x8e   : > { %756 = vmatpush3.bf16.msra.mxu0 %v243_v56  ;;  %790 = vmatpush3.bf16.msra.mxu1 %v243_v56 }
  0x8f   : > { %757 = vmatprep.subr.bf16.mxu0 %v244_v57  ;;  %783 = vmatprep.subr.bf16.mxu1 %v244_v57 }
  0x92   : > { %758 = vmatpush3.bf16.msra.mxu0 %v244_v57  ;;  %791 = vmatpush3.bf16.msra.mxu1 %v244_v57  ;;  %v464_v57 = vld [vmem:[%s1268_s30 + $0x20] sm:$0xff] (!%p714_p6) }
  0x93   : > { %759 = vmatprep.subr.bf16.mxu0 %v245_v58  ;;  %784 = vmatprep.subr.bf16.mxu1 %v245_v58  ;;  %vm496_vm4 = vcmp.ne.f32.partialorder (!%p714_p6), %v464_v57, 0.0 }
  0x96   : > { %760 = vmatpush3.bf16.msra.mxu0 %v245_v58  ;;  %792 = vmatpush3.bf16.msra.mxu1 %v245_v58 }
  0x99   : > { %762 = vmatmul.mubr.bf16.vlgmr.msra.gmra.mrb[0].mxu0 %v894_v59  ;;  %770 = vmatmul.mubr.bf16.vlgmr.msra.gmra.mrb[0].mxu1 %v895_v60  ;;  %v465_v60 = vld [vmem:[%s1268_s30 + $0x28] sm:$0xff] (!%p714_p6) }
  0x9a   : > { %765 = vmatprep.mubr.bf16.mxu0 %v896_v61  ;;  %773 = vmatprep.mubr.bf16.mxu1 %v897_v62  ;;  %vm497_vm5 = vcmp.ne.f32.partialorder (!%p714_p6), %v465_v60, 0.0 }
  0xa1   : > { %766 = vmatmul.mubr.bf16.gmra.mrb[4].mxu0 %v898_v63  ;;  %774 = vmatmul.mubr.bf16.gmra.mrb[4].mxu1 %v899_v0 }
 0x16c   : > { %v763_v5 = vpop.f32.mrb[0].mxu0  ;;  %v771_v6 = vpop.f32.mrb[0].mxu1 }
 0x16d   : > { %v425_v9 = vadd.f32 %v763_v5, %v264_v1  ;;  %v433_v10 = vadd.f32 %v771_v6, %v272_v2  ;;  %v360_v11 = vpop.f32.mrb[1].mxu0  ;;  %v392_v12 = vpop.f32.mrb[1].mxu1  ;;  %v466_v1 = vld [vmem:[%s1268_s30 + $0x30] sm:$0xff] (!%p714_p6)  ;;  %v467_v2 = vld [vmem:[%s1268_s30 + $0x38] sm:$0xff] (!%p714_p6) }
 0x16e   : > { %v423_v15 = vadd.f32 %v360_v11, %v262_v3  ;;  %v431_v16 = vadd.f32 %v392_v12, %v270_v4  ;;  %v764_v17 = vpop.f32.mrb[2].mxu0  ;;  %v772_v18 = vpop.f32.mrb[2].mxu1  ;;  %vm498_vm6 = vcmp.ne.f32.partialorder (!%p714_p6), %v466_v1, 0.0  ;;  %vm499_vm7 = vcmp.ne.f32.partialorder (!%p714_p6), %v467_v2, 0.0 }
 0x16f   : > { %441 = vst [vmem:[#allocation4 + $0x10] sm:$0xff] %v425_v9  ;;  %449 = vst [vmem:[#allocation4 + $0x50] sm:$0xff] %v433_v10  ;;  %v426_v19 = vadd.f32 %v764_v17, %v265_v7  ;;  %v434_v20 = vadd.f32 %v772_v18, %v273_v8  ;;  %v363_v21 = vpop.f32.mrb[3].mxu0  ;;  %v395_v22 = vpop.f32.mrb[3].mxu1  ;;  %v468_v7 = vld [vmem:[%s1268_s30 + $0x40] sm:$0xff] (!%p714_p6)  ;;  %v469_v8 = vld [vmem:[%s1268_s30 + $0x48] sm:$0xff] (!%p714_p6) }
 0x170   : > { %439 = vst [vmem:[#allocation4] sm:$0xff] %v423_v15  ;;  %447 = vst [vmem:[#allocation4 + $0x40] sm:$0xff] %v431_v16  ;;  %v424_v23 = vadd.f32 %v363_v21, %v263_v13  ;;  %v432_v24 = vadd.f32 %v395_v22, %v271_v14  ;;  %vm500_vm8 = vcmp.ne.f32.partialorder (!%p714_p6), %v468_v7, 0.0  ;;  %v470_v13 = vld [vmem:[%s1268_s30 + $0x50] sm:$0xff] (!%p714_p6)  ;;  %vm501_vm9 = vcmp.ne.f32.partialorder (!%p714_p6), %v469_v8, 0.0  ;;  %v471_v17 = vld [vmem:[%s1268_s30 + $0x58] sm:$0xff] (!%p714_p6) }
 0x171   : > { %442 = vst [vmem:[#allocation4 + $0x18] sm:$0xff] %v426_v19  ;;  %450 = vst [vmem:[#allocation4 + $0x58] sm:$0xff] %v434_v20  ;;  %vm502_vm10 = vcmp.ne.f32.partialorder (!%p714_p6), %v470_v13, 0.0  ;;  %vm503_vm11 = vcmp.ne.f32.partialorder (!%p714_p6), %v471_v17, 0.0  ;;  %v472_v22 = vld [vmem:[%s1268_s30 + $0x60] sm:$0xff] (!%p714_p6) }
 0x172   : > { %440 = vst [vmem:[#allocation4 + $0x8] sm:$0xff] %v424_v23  ;;  %448 = vst [vmem:[#allocation4 + $0x48] sm:$0xff] %v432_v24  ;;  %v473_v23 = vld [vmem:[%s1268_s30 + $0x68] sm:$0xff] (!%p714_p6)  ;;  %vm504_vm12 = vcmp.ne.f32.partialorder (!%p714_p6), %v472_v22, 0.0 }
 0x173   : > { %vm505_vm13 = vcmp.ne.f32.partialorder (!%p714_p6), %v473_v23, 0.0 }
 0x174   : > { %v767_v29 = vpop.f32.mrb[4].mxu0  ;;  %v775_v30 = vpop.f32.mrb[4].mxu1  ;;  %458 = sbr.rel (%p714_p6) target bundleno = 417 (0x1a1), region = 44 }
 0x175   : > { %v429_v33 = vadd.f32 %v767_v29, %v268_v25  ;;  %v437_v34 = vadd.f32 %v775_v30, %v276_v26  ;;  %v376_v35 = vpop.f32.mrb[5].mxu0  ;;  %v408_v36 = vpop.f32.mrb[5].mxu1  ;;  %v474_v29 = vld [vmem:[%s1268_s30 + $0x70] sm:$0xff] (!%p714_p6)  ;;  %v475_v30 = vld [vmem:[%s1268_s30 + $0x78] sm:$0xff] (!%p714_p6) }
 0x176   : > { %v427_v39 = vadd.f32 %v376_v35, %v266_v27  ;;  %v435_v40 = vadd.f32 %v408_v36, %v274_v28  ;;  %v768_v41 = vpop.f32.mrb[6].mxu0  ;;  %v776_v42 = vpop.f32.mrb[6].mxu1  ;;  %v478_v51 = vld [vmem:[#allocation4 + $0x10] sm:$0xff] (!%p714_p6)  ;;  %vm506_vm14 = vcmp.ne.f32.partialorder (!%p714_p6), %v474_v29, 0.0  ;;  %vm507_vm15 = vcmp.ne.f32.partialorder (!%p714_p6), %v475_v30, 0.0 }
 0x177   : > { %445 = vst [vmem:[#allocation4 + $0x30] sm:$0xff] %v429_v33  ;;  %453 = vst [vmem:[#allocation4 + $0x70] sm:$0xff] %v437_v34  ;;  %v430_v43 = vadd.f32 %v768_v41, %v269_v31  ;;  %v438_v44 = vadd.f32 %v776_v42, %v277_v32  ;;  %v379_v45 = vpop.f32.mrb[7].mxu0  ;;  %v411_v46 = vpop.f32.mrb[7].mxu1  ;;  %v476_v49 = vld [vmem:[#allocation4] sm:$0xff] (!%p714_p6)  ;;  %v1283_v63 = vsel (!%p714_p6), %vm494_vm2, %v462_v54, %v478_v51  ;;  %v486_v18 = vld [vmem:[#allocation4 + $0x50] sm:$0xff] (!%p714_p6) }
 0x178   : > { %443 = vst [vmem:[#allocation4 + $0x20] sm:$0xff] %v427_v39  ;;  %451 = vst [vmem:[#allocation4 + $0x60] sm:$0xff] %v435_v40  ;;  %v428_v47 = vadd.f32 %v379_v45, %v267_v37  ;;  %v436_v48 = vadd.f32 %v411_v46, %v275_v38  ;;  %v479_v56 = vld [vmem:[#allocation4 + $0x18] sm:$0xff] (!%p714_p6)  ;;  %v1278_v58 = vsel (!%p714_p6), %vm492_vm0, %v460_v52, %v476_v49  ;;  %v484_v11 = vld [vmem:[#allocation4 + $0x40] sm:$0xff] (!%p714_p6) }
 0x179   : > { %446 = vst [vmem:[#allocation4 + $0x38] sm:$0xff] %v430_v43  ;;  %454 = vst [vmem:[#allocation4 + $0x78] sm:$0xff] %v438_v44  ;;  %v477_v50 = vld [vmem:[#allocation4 + $0x8] sm:$0xff] (!%p714_p6)  ;;  %v1285_v0 = vsel (!%p714_p6), %vm495_vm3, %v463_v55, %v479_v56  ;;  %v516_v16 = vsel (!%p714_p6), %vm500_vm8, %v468_v7, %v484_v11  ;;  %v487_v19 = vld [vmem:[#allocation4 + $0x58] sm:$0xff] (!%p714_p6)  ;;  %v518_v26 = vsel (!%p714_p6), %vm502_vm10, %v470_v13, %v486_v18 }
 0x17a   : > { %444 = vst [vmem:[#allocation4 + $0x28] sm:$0xff] %v428_v47  ;;  %452 = vst [vmem:[#allocation4 + $0x68] sm:$0xff] %v436_v48  ;;  %v1280_v59 = vsel (!%p714_p6), %vm493_vm1, %v461_v53, %v477_v50  ;;  %v485_v12 = vld [vmem:[#allocation4 + $0x48] sm:$0xff] (!%p714_p6)  ;;  %v525_v14 = vpack.c.bf16 (!%p714_p6), %v1285_v0, %v1283_v63  ;;  %v519_v27 = vsel (!%p714_p6), %vm503_vm11, %v471_v17, %v487_v19 }
 0x17b   : > { %s1405_s8 = smov (!%p532_p7, %s536_s8), %s535_s5  ;;  %v524_v9 = vpack.c.bf16 %v1280_v59, %v1278_v58  ;;  %v517_v21 = vsel %vm501_vm9, %v469_v8, %v485_v12  ;;  %v529_v35 = vpack.c.bf16 %v519_v27, %v518_v26  ;;  %p804_p10 = scmp.gt.s32.totalorder (!%p720_p9), %s1048_s13, 0 }
 0x17c   : > { %p717_p8 = scmp.lt.s32.totalorder %s1405_s8, 0  ;;  %s542_s24 = sadd.s32 2, %s1405_s8  ;;  %v528_v31 = vpack.c.bf16 %v517_v21, %v516_v16 }
 0x17e   : > { %v482_v3 = vld [vmem:[#allocation4 + $0x30] sm:$0xff]  ;;  %s1407_s24 = smov (!%p717_p8, %s542_s24), %s1405_s8 }
 0x17f   : > { %v480_v61 = vld [vmem:[#allocation4 + $0x20] sm:$0xff]  ;;  %v1301_v10 = vsel %vm498_vm6, %v466_v1, %v482_v3  ;;  %v490_v33 = vld [vmem:[#allocation4 + $0x70] sm:$0xff]  ;;  %s718_s6 = sshll.u32 %s1407_s24, 4 }
 0x180   : > { %v1293_v4 = vsel %vm496_vm4, %v464_v57, %v480_v61  ;;  %v483_v6 = vld [vmem:[#allocation4 + $0x38] sm:$0xff]  ;;  %v488_v24 = vld [vmem:[#allocation4 + $0x60] sm:$0xff]  ;;  %v522_v37 = vsel %vm506_vm14, %v474_v29, %v490_v33  ;;  %s547_s25 = sadd.s32 %s718_s6, %s544_s23  ;;  %561 = sbr.rel (%p720_p9) target bundleno = 417 (0x1a1), region = 48 }
 0x181   : > { %v481_v62 = vld [vmem:[#allocation4 + $0x28] sm:$0xff]  ;;  %v515_v15 = vsel %vm499_vm7, %v467_v2, %v483_v6  ;;  %v520_v32 = vsel %vm504_vm12, %v472_v22, %v488_v24  ;;  %v491_v34 = vld [vmem:[#allocation4 + $0x78] sm:$0xff]  ;;  %s719_s7 = sshll.u32 %s547_s25, 3 }
 0x182   : > { %v1295_v5 = vsel %vm497_vm5, %v465_v60, %v481_v62  ;;  %v527_v25 = vpack.c.bf16 %v515_v15, %v1301_v10  ;;  %v489_v28 = vld [vmem:[#allocation4 + $0x68] sm:$0xff]  ;;  %v523_v39 = vsel %vm507_vm15, %v475_v30, %v491_v34  ;;  %s549_s9 = scalar_lea.vmem [#allocation3], %s719_s7 }
 0x183   : > { %v526_v20 = vpack.c.bf16 %v1295_v5, %v1293_v4  ;;  %v521_v36 = vsel %vm505_vm13, %v473_v23, %v489_v28  ;;  %v531_v40 = vpack.c.bf16 %v523_v39, %v522_v37  ;;  %550 = vst [vmem:[%s549_s9] sm:$0xff] %v524_v9  ;;  %551 = vst [vmem:[%s549_s9 + $0x8] sm:$0xff] %v525_v14 }
 0x184   : > { %v530_v38 = vpack.c.bf16 %v521_v36, %v520_v32  ;;  %553 = vst [vmem:[%s549_s9 + $0x18] sm:$0xff] %v527_v25  ;;  %554 = vst [vmem:[%s549_s9 + $0x20] sm:$0xff] %v528_v31 }
 0x185   : > { %552 = vst [vmem:[%s549_s9 + $0x10] sm:$0xff] %v526_v20  ;;  %555 = vst [vmem:[%s549_s9 + $0x28] sm:$0xff] %v529_v35 }
 0x186   : > { %556 = vst [vmem:[%s549_s9 + $0x30] sm:$0xff] %v530_v38  ;;  %557 = vst [vmem:[%s549_s9 + $0x38] sm:$0xff] %v531_v40 }
 0x187   : > { %1023 = dma.done.wait (%p804_p10), [#allocation6 + $0x2], 2048 }
 0x188   : > { %1025 = vsyncadd (%p804_p10), [#allocation6 + $0x2], 4294965248  ;;  %p805_p12 = scmp.eq.s32.totalorder %s1048_s13, 1  ;;  %570 = vst [vmem:[#allocation5] sm:$0xff] %v1278_v58  ;;  %s728_s14 = sshll.u32 %s1048_s13, 11 }
 0x189   : > { %571 = vst [vmem:[#allocation5 + $0x8] sm:$0xff] %v1280_v59  ;;  %572 = vst [vmem:[#allocation5 + $0x10] sm:$0xff] %v1283_v63  ;;  %s587_s27 = scalar_lea.hbm %s1377_s2, %s728_s14  ;;  %s1076_s3 = smov [#allocation5]  }
 0x18a   : > { %573 = vst [vmem:[#allocation5 + $0x18] sm:$0xff] %v1285_v0  ;;  %574 = vst [vmem:[#allocation5 + $0x20] sm:$0xff] %v1293_v4  ;;  %s596_s4 = sshll.u32 %s1076_s3, 4  ;;  %s597_s4 = int_to_ptr.vmem [resolvable:$true] %s596_s4 }
 0x18b   : > { %575 = vst [vmem:[#allocation5 + $0x28] sm:$0xff] %v1295_v5  ;;  %576 = vst [vmem:[#allocation5 + $0x30] sm:$0xff] %v1301_v10  ;;  %s952_s30 = scalar_lea.vmem %s597_s4, 2048  ;;  %p957_p2 = scmp.lt.s32.totalorder %s597_s4, %s597_s4 }
 0x18c   : > { %577 = vst [vmem:[#allocation5 + $0x38] sm:$0xff] %v515_v15  ;;  %578 = vst [vmem:[#allocation5 + $0x40] sm:$0xff] %v516_v16  ;;  %p953_p0 = scmp.ne.s32.totalorder %s597_s4, %s952_s30  ;;  %p958_p3 = scmp.lt.s32.totalorder %s952_s30, %s952_s30 }
 0x18d   : > { %579 = vst [vmem:[#allocation5 + $0x48] sm:$0xff] %v517_v21  ;;  %580 = vst [vmem:[#allocation5 + $0x50] sm:$0xff] %v518_v26 }
 0x18e   : > { %581 = vst [vmem:[#allocation5 + $0x58] sm:$0xff] %v519_v27  ;;  %582 = vst [vmem:[#allocation5 + $0x60] sm:$0xff] %v520_v32  ;;  %p959_p4 = por %p958_p3, %p957_p2 }
 0x18f   : > { %583 = vst [vmem:[#allocation5 + $0x68] sm:$0xff] %v521_v36  ;;  %584 = vst [vmem:[#allocation5 + $0x70] sm:$0xff] %v522_v37 }
 0x190   : > { %585 = vst [vmem:[#allocation5 + $0x78] sm:$0xff] %v523_v39  ;;  %p960_p13 = pnand %p959_p4, %p953_p0 }
 0x192   : > { %963 = shalt.err (!%p960_p13)  }
 0x193   : > { %s964_s12 = scalar_lea.hbm %s587_s27, 2048  ;;  %s966_s8 = scalar_lea.hbm %s1377_s2, 4096 }
 0x194   : > { %p965_p1 = scmp.ne.s32.totalorder %s587_s27, %s964_s12  ;;  %p967_p11 = scmp.lt.u32.totalorder %s587_s27, %s1377_s2 }
 0x195   : > { %p968_p5 = scmp.lt.u32.totalorder %s966_s8, %s964_s12  ;;  %p970_p7 = scmp.lt.u32.totalorder %s964_s12, %s587_s27 }
 0x197   : > { %p969_p6 = por %p968_p5, %p967_p11 }
 0x199   : > { %p971_p8 = por %p970_p7, %p969_p6 }
 0x19b   : > { %p972_p9 = pnand %p971_p8, %p965_p1 }
 0x19d   : > { %975 = shalt.err (!%p972_p9)  }
 0x19e   : > { %599 = dma.vmem_to_hbm [thread:$0]  %s597_s4, 2048, %s587_s27, [#allocation6 + $0x2] }
 0x19f   : > { %1027 = dma.done.wait (%p805_p12), [#allocation6 + $0x2], 2048 }
 0x1a0   : > { %1029 = vsyncadd (%p805_p12), [#allocation6 + $0x2], 4294965248 }
 0x1a1 PF: > { %s15_s18 = sadd.s32 1, %s1068_s18   ;;  %s1381_s9 = smov %s1036_s10 }
 0x1a2   : > { %p12_p10 = scmp.ge.s32.totalorder %s15_s18, 13   ;;  %s1382_s10 = smov %s1040_s11 }
 0x1a3   : > { %s1383_s11 = smov %s1173_s29  ;;  %s1384_s12 = smov %s1056_s15 }
 0x1a4   : > { %s1385_s13 = smov %s1060_s16  ;;  %s1386_s14 = smov %s1064_s17 }
 0x1a5   : > { %s1387_s15 = smov %s1391_s20  ;;  %s1388_s16 = smov %s1395_s21 }
 0x1a6   : > { %s1389_s17 = smov %s1399_s22  ;;  %14 = sbr.rel (!%p12_p10) target bundleno = 6 (0x6), region = 89 }
 0x1ad   :  { %607 = vsyncpa [#allocation8], 1 }
 0x1ae   :  { %609 = vsyncpa [#allocation8 + $0x1], 1 }
 0x1af   :  { %610 = vsyncmov [#allocation6] }
 0x1b2   :  { %s611_s6 = vpop.sfrf %610 }
 0x1b3   :  { %p724_p12 = scmp.ne.s32.totalorder %s611_s6, 0 }
 0x1b5   :  { %615 = shalt.err (%p724_p12)  }
 0x1b6   :  { %617 = vsyncmov [#allocation6 + $0x1] }
 0x1b9   :  { %s618_s29 = vpop.sfrf %617 }
 0x1ba   :  { %p725_p0 = scmp.ne.s32.totalorder %s618_s29, 0 }
 0x1bc   :  { %622 = shalt.err (%p725_p0)  }
 0x1bd   :  { %624 = vsyncmov [#allocation6 + $0x2] }
 0x1c0   :  { %s625_s25 = vpop.sfrf %624 }
 0x1c1   :  { %p726_p2 = scmp.ne.s32.totalorder %s625_s25, 0 }
 0x1c3   :  { %629 = shalt.err (%p726_p2)  }

</bundles_post_ra>
